<compile_context>
chip_gen: v6e
topology: v6e:2x2x1
jax: 0.10.0
libtpu: 0.0.40
codegen_flags: <defaults>
</compile_context>

<pallas_src>
import functools

import jax
import jax.numpy as jnp
from jax.experimental import pallas as pl
from jax.experimental.pallas import tpu as pltpu

IN_FEATURES = 128
OUT_FEATURES = 512
BN_EPS = 1e-5


def _vmem_cap_bytes():
    """Scoped-VMEM cap: physical capacity minus ~8 MiB headroom, <= 100 MiB."""
    try:
        cap = int(pltpu.get_tpu_info().vmem_capacity_bytes)
    except Exception:
        cap = 64 << 20  # conservative fallback: v7x per-TensorCore VMEM
    return min(cap - (8 << 20), 100 << 20)


# ---------------------------------------------------------------------------
# Fused single-block path (whole batch resident): Linear -> ReLU -> BatchNorm.
# ---------------------------------------------------------------------------
def _fused_kernel(x_ref, w_ref, gamma_ref, beta_ref, o_ref):
    # x_ref:     (B, IN_FEATURES)   full batch
    # w_ref:     (IN_FEATURES, tn)  one tile of output features
    # gamma_ref: (1, tn), beta_ref: (1, tn)
    # o_ref:     (B, tn)
    # Linear (no bias) on the MXU with f32 accumulation, ReLU on the VPU.
    h = jnp.maximum(
        jnp.dot(x_ref[...], w_ref[...], preferred_element_type=jnp.float32), 0.0)

    # Stage the post-ReLU activation through the output block (f32 output only)
    # so no extra (B, tn) f32 temp has to stay live across the BN statistics.
    if o_ref.dtype == jnp.float32:
        o_ref[...] = h
        h = o_ref[...]

    # BatchNorm1d (training mode): per-feature batch mean and *biased* batch
    # variance, computed two-pass (mean first, then centered second moment) to
    # avoid E[h^2] - mean^2 cancellation.
    inv_b = 1.0 / h.shape[0]
    mean = jnp.sum(h, axis=0, keepdims=True) * inv_b
    centered = h - mean
    var = jnp.sum(centered * centered, axis=0, keepdims=True) * inv_b
    inv_std = jax.lax.rsqrt(var + BN_EPS)
    o_ref[...] = (centered * (inv_std * gamma_ref[...])
                  + beta_ref[...]).astype(o_ref.dtype)


# ---------------------------------------------------------------------------
# Two-pass path for batches that do not fit a single block in VMEM.
# Pass 1: ReLU(x @ W) tiles -> HBM, accumulate per-feature sum / sumsq.
# Pass 2: normalize each tile with the global batch statistics.
# ---------------------------------------------------------------------------
def _linear_relu_stats_kernel(x_ref, w_ref, h_ref, stats_ref):
    # grid = (nj, nb): j (feature tiles) parallel, i (batch tiles) last/arbitrary.
    i = pl.program_id(1)

    @pl.when(i == 0)
    def _():
        stats_ref[...] = jnp.zeros_like(stats_ref)

    h = jnp.maximum(
        jnp.dot(x_ref[...], w_ref[...], preferred_element_type=jnp.float32), 0.0)
    h_ref[...] = h.astype(h_ref.dtype)
    s = jnp.sum(h, axis=0, keepdims=True)
    s2 = jnp.sum(h * h, axis=0, keepdims=True)
    stats_ref[...] += jnp.concatenate([s, s2], axis=0)


def _bn_apply_kernel(stats_ref, gamma_ref, beta_ref, h_ref, o_ref, *, batch_size):
    stats = stats_ref[...]
    inv_b = 1.0 / batch_size
    mean = stats[0:1, :] * inv_b
    var = jnp.maximum(stats[1:2, :] * inv_b - mean * mean, 0.0)
    inv_std = jax.lax.rsqrt(var + BN_EPS)
    h = h_ref[...].astype(jnp.float32)
    o_ref[...] = ((h - mean) * (inv_std * gamma_ref[...])
                  + beta_ref[...]).astype(o_ref.dtype)


# ---------------------------------------------------------------------------
# Wrapper
# ---------------------------------------------------------------------------
def embedding_encoder(x, w_t, gamma, beta, *, tile_n=256, tile_b=None,
                      mxu_dtype=jnp.float32, out_dtype=jnp.float32,
                      two_pass=None):
    """x: (B, 128); w_t: (128, 512) (transposed Linear weight); gamma/beta: (512,).

    tile_n=256 (default) -> grid=(2,): shardable across both v7x TensorCores
    (BN stats are per-feature, so feature tiles are independent) and pipelines
    the weight DMA / output writeback on all generations.  mxu_dtype=bfloat16
    feeds the MXU at native bf16 rate (f32 accumulation, BN math stays f32);
    out_dtype=bfloat16 halves the dominant output writeback.  Batches whose
    single-block footprint exceeds the VMEM ceiling use a two-pass structure.
    """
    B, F_in = x.shape
    F_in_w, F_out = w_t.shape
    assert F_in == IN_FEATURES and F_in_w == IN_FEATURES and F_out == OUT_FEATURES
    assert F_out % tile_n == 0 and tile_n % 128 == 0

    # Pre-cast MXU operands in the wrapper (halves the x / weight DMA for bf16
    # and removes per-grid-step VPU casts inside the kernel).
    if x.dtype != mxu_dtype:
        x = x.astype(mxu_dtype)
    if w_t.dtype != mxu_dtype:
        w_t = w_t.astype(mxu_dtype)
    gamma2 = gamma.astype(jnp.float32).reshape(1, F_out)
    beta2 = beta.astype(jnp.float32).reshape(1, F_out)

    in_itemsize = jnp.dtype(mxu_dtype).itemsize
    out_itemsize = jnp.dtype(out_dtype).itemsize
    vmem_cap = _vmem_cap_bytes()

    # Fused per-step footprint: double-buffered x / weight tile / gamma / beta /
    # output block, plus the live (B, tile_n) f32 post-ReLU + centered temps.
    fused_step_bytes = 2 * (B * F_in * in_itemsize
                            + F_in * tile_n * in_itemsize
                            + 2 * tile_n * 4
                            + B * tile_n * out_itemsize) + 2 * B * tile_n * 4
    if two_pass is None:
        two_pass = fused_step_bytes + (4 << 20) > vmem_cap

    matmul_flops = 2 * B * F_in * F_out

    if not two_pass:
        vmem_limit = min(max(fused_step_bytes + (4 << 20), 16 << 20), vmem_cap)
        cost = pl.CostEstimate(
            flops=matmul_flops + 6 * B * F_out,
            transcendentals=F_out,
            bytes_accessed=(B * F_in + F_in * F_out) * in_itemsize
                           + 2 * F_out * 4 + B * F_out * out_itemsize)
        return pl.pallas_call(
            _fused_kernel,
            out_shape=jax.ShapeDtypeStruct((B, F_out), out_dtype),
            grid_spec=pltpu.PrefetchScalarGridSpec(
                num_scalar_prefetch=0,
                grid=(F_out // tile_n,),
                in_specs=[
                    pl.BlockSpec((B, F_in), lambda j: (0, 0)),        # x (reused)
                    pl.BlockSpec((F_in, tile_n), lambda j: (0, j)),   # weight tile
                    pl.BlockSpec((1, tile_n), lambda j: (0, j)),      # gamma tile
                    pl.BlockSpec((1, tile_n), lambda j: (0, j)),      # beta tile
                ],
                out_specs=pl.BlockSpec((B, tile_n), lambda j: (0, j)),
            ),
            compiler_params=pltpu.CompilerParams(
                dimension_semantics=("parallel",),
                vmem_limit_bytes=vmem_limit,
            ),
            cost_estimate=cost,
        )(x, w_t, gamma2, beta2)

    # ----------------------- two-pass (large B) path -----------------------
    if tile_b is None:
        tile_b = B
        for cand in (1024, 512, 256, 128, 64, 32, 16, 8):
            if B % cand == 0:
                tile_b = cand
                break
    assert B % tile_b == 0 and (tile_b % 8 == 0 or tile_b == B)
    nb = B // tile_b
    nj = F_out // tile_n

    pass1_step = (2 * (tile_b * F_in * in_itemsize
                       + F_in * tile_n * in_itemsize
                       + tile_b * tile_n * 4)
                  + 2 * tile_n * 4 + tile_b * tile_n * 4)
    vmem1 = min(max(pass1_step + (4 << 20), 16 << 20), vmem_cap)
    h_f32, stats = pl.pallas_call(
        _linear_relu_stats_kernel,
        out_shape=(jax.ShapeDtypeStruct((B, F_out), jnp.float32),
                   jax.ShapeDtypeStruct((2, F_out), jnp.float32)),
        grid_spec=pltpu.PrefetchScalarGridSpec(
            num_scalar_prefetch=0,
            grid=(nj, nb),
            in_specs=[
                pl.BlockSpec((tile_b, F_in), lambda j, i: (i, 0)),
                pl.BlockSpec((F_in, tile_n), lambda j, i: (0, j)),
            ],
            out_specs=(
                pl.BlockSpec((tile_b, tile_n), lambda j, i: (i, j)),
                pl.BlockSpec((2, tile_n), lambda j, i: (0, j)),   # accumulator
            ),
        ),
        compiler_params=pltpu.CompilerParams(
            dimension_semantics=("parallel", "arbitrary"),
            vmem_limit_bytes=vmem1,
        ),
        cost_estimate=pl.CostEstimate(
            flops=matmul_flops + 4 * B * F_out,
            transcendentals=0,
            bytes_accessed=(B * F_in + F_in * F_out) * in_itemsize
                           + (B * F_out + 2 * F_out) * 4),
    )(x, w_t)

    pass2_step = (2 * (tile_b * tile_n * 4 + 4 * tile_n * 4
                       + tile_b * tile_n * out_itemsize)
                  + tile_b * tile_n * 4)
    vmem2 = min(max(pass2_step + (4 << 20), 16 << 20), vmem_cap)
    kernel2 = functools.partial(_bn_apply_kernel, batch_size=B)
    return pl.pallas_call(
        kernel2,
        out_shape=jax.ShapeDtypeStruct((B, F_out), out_dtype),
        grid_spec=pltpu.PrefetchScalarGridSpec(
            num_scalar_prefetch=0,
            grid=(nb, nj),
            in_specs=[
                pl.BlockSpec((2, tile_n), lambda i, j: (0, j)),       # sum / sumsq
                pl.BlockSpec((1, tile_n), lambda i, j: (0, j)),       # gamma
                pl.BlockSpec((1, tile_n), lambda i, j: (0, j)),       # beta
                pl.BlockSpec((tile_b, tile_n), lambda i, j: (i, j)),  # h tile
            ],
            out_specs=pl.BlockSpec((tile_b, tile_n), lambda i, j: (i, j)),
        ),
        compiler_params=pltpu.CompilerParams(
            dimension_semantics=("parallel", "parallel"),
            vmem_limit_bytes=vmem2,
        ),
        cost_estimate=pl.CostEstimate(
            flops=5 * B * F_out,
            transcendentals=F_out,
            bytes_accessed=(B * F_out + 4 * F_out) * 4 + B * F_out * out_itemsize),
    )(stats, gamma2, beta2, h_f32)


# ---------------------------------------------------------------------------
# Pure-JAX reference (PyTorch train-mode forward semantics).
# ---------------------------------------------------------------------------
def reference(x, w_t, gamma, beta, *, mxu_dtype=jnp.float32):
    h = jnp.dot(x.astype(mxu_dtype), w_t.astype(mxu_dtype),
                preferred_element_type=jnp.float32)
    h = jnp.maximum(h, 0.0)
    mean = jnp.mean(h, axis=0, keepdims=True)
    var = jnp.mean(jnp.square(h - mean), axis=0, keepdims=True)
    return (h - mean) / jnp.sqrt(var + BN_EPS) * gamma[None, :] + beta[None, :]


if __name__ == "__main__":
    key = jax.random.PRNGKey(0)
    k_x, k_w, k_g, k_b, k_x2 = jax.random.split(key, 5)

    B = 8
    x = jax.random.normal(k_x, (B, IN_FEATURES), dtype=jnp.float32)

    # Deterministic synthetic parameters (no checkpoint load).
    # PyTorch Linear weight is (out, in); we keep it transposed as (in, out).
    w_t = jax.random.normal(k_w, (IN_FEATURES, OUT_FEATURES), dtype=jnp.float32) * (
        1.0 / (IN_FEATURES ** 0.5))
    gamma = 1.0 + 0.1 * jax.random.normal(k_g, (OUT_FEATURES,), dtype=jnp.float32)
    beta = 0.1 * jax.random.normal(k_b, (OUT_FEATURES,), dtype=jnp.float32)

    ref = reference(x, w_t, gamma, beta)

    # 1) Default fused path: tile_n=256 -> grid=(2,), f32 MXU, f32 output.
    out = jax.block_until_ready(embedding_encoder(x, w_t, gamma, beta))
    assert out.shape == (B, OUT_FEATURES)
    assert jnp.allclose(out, ref, atol=1e-3, rtol=1e-3), float(
        jnp.max(jnp.abs(out - ref)))

    # 2) Single-grid-step variant (tile_n=512).
    out512 = jax.block_until_ready(
        embedding_encoder(x, w_t, gamma, beta, tile_n=512))
    assert jnp.allclose(out512, ref, atol=1e-3, rtol=1e-3), float(
        jnp.max(jnp.abs(out512 - ref)))

    # 3) bf16-MXU path (f32 accumulation), validated against a reference that
    #    uses the same bf16 matmul inputs.
    ref_bf16 = reference(x, w_t, gamma, beta, mxu_dtype=jnp.bfloat16)
    out_bf16 = jax.block_until_ready(
        embedding_encoder(x, w_t, gamma, beta, mxu_dtype=jnp.bfloat16))
    assert jnp.allclose(out_bf16, ref_bf16, atol=1e-2, rtol=1e-2), float(
        jnp.max(jnp.abs(out_bf16 - ref_bf16)))

    # 4) bf16 output dtype (internal math stays f32; only the store is rounded).
    out_b16o = jax.block_until_ready(
        embedding_encoder(x, w_t, gamma, beta, out_dtype=jnp.bfloat16))
    assert out_b16o.dtype == jnp.bfloat16
    assert jnp.allclose(out_b16o.astype(jnp.float32), ref, atol=5e-2, rtol=5e-2), float(
        jnp.max(jnp.abs(out_b16o.astype(jnp.float32) - ref)))

    # 5) Two-pass (large-B) path, forced at small shapes: B=32 in 16-row tiles.
    B2 = 32
    x2 = jax.random.normal(k_x2, (B2, IN_FEATURES), dtype=jnp.float32)
    ref2 = reference(x2, w_t, gamma, beta)
    out2 = jax.block_until_ready(
        embedding_encoder(x2, w_t, gamma, beta, two_pass=True, tile_b=16))
    assert jnp.allclose(out2, ref2, atol=1e-3, rtol=1e-3), float(
        jnp.max(jnp.abs(out2 - ref2)))

    print("KERNEL_OK")
</pallas_src>

<mosaic_0001>
module attributes {stable_mosaic.version = 11 : i64} {
  func.func @_fused_kernel(%arg0: i32, %arg1: memref<8x128xf32, #tpu.memory_space<vmem>>, %arg2: memref<128x256xf32, #tpu.memory_space<vmem>>, %arg3: memref<1x256xf32, #tpu.memory_space<vmem>>, %arg4: memref<1x256xf32, #tpu.memory_space<vmem>>, %arg5: memref<8x256xf32, #tpu.memory_space<vmem>>) attributes {dimension_semantics = [#tpu.dimension_semantics<parallel>], iteration_bounds = array<i64: 2>, scalar_prefetch = 0 : i64, scratch_operands = 0 : i64, tpu.core_type = #tpu.core_type<tc>, window_params = [{pipeline_mode = #tpu.pipeline_mode<synchronous>, transform_indices = @transform_0, window_bounds = array<i64: 8, 128>}, {transform_indices = @transform_1, window_bounds = array<i64: 128, 256>}, {transform_indices = @transform_2, window_bounds = array<i64: 1, 256>}, {transform_indices = @transform_3, window_bounds = array<i64: 1, 256>}, {transform_indices = @transform_4, window_bounds = array<i64: 8, 256>}]} {
    %c0 = arith.constant 0 : index
    %c0_0 = arith.constant 0 : index
    %0 = vector.load %arg1[%c0, %c0_0] : memref<8x128xf32, #tpu.memory_space<vmem>>, vector<8x128xf32>
    %c0_1 = arith.constant 0 : index
    %c0_2 = arith.constant 0 : index
    %1 = vector.load %arg2[%c0_1, %c0_2] : memref<128x256xf32, #tpu.memory_space<vmem>>, vector<128x256xf32>
    %cst = arith.constant dense<0.000000e+00> : vector<8x256xf32>
    %2 = tpu.matmul %0, %1, %cst {dimension_numbers = #tpu.dot_dimension_numbers<[1], [0], [0], [1], [0, 0, 1, 1], [], []>} : vector<8x128xf32>, vector<128x256xf32>, vector<8x256xf32> -> vector<8x256xf32>
    %cst_3 = arith.constant 0.000000e+00 : f32
    %3 = vector.broadcast %cst_3 : f32 to vector<8x256xf32>
    %4 = arith.maximumf %2, %3 : vector<8x256xf32>
    %c0_4 = arith.constant 0 : index
    %c0_5 = arith.constant 0 : index
    %5 = vector.load %arg5[%c0_4, %c0_5] : memref<8x256xf32, #tpu.memory_space<vmem>>, vector<8x256xf32>
    tpu.vector_store %arg5[%c0_4, %c0_5], %4 {strides = array<i32>} : memref<8x256xf32, #tpu.memory_space<vmem>>, vector<8x256xf32>,
    %c0_6 = arith.constant 0 : index
    %c0_7 = arith.constant 0 : index
    %6 = vector.load %arg5[%c0_6, %c0_7] : memref<8x256xf32, #tpu.memory_space<vmem>>, vector<8x256xf32>
    %cst_8 = arith.constant dense<0.000000e+00> : vector<256xf32>
    %7 = vector.multi_reduction <add>, %6, %cst_8 [0] : vector<8x256xf32> to vector<256xf32>
    %8 = vector.shape_cast %7 : vector<256xf32> to vector<1x256xf32>
    %cst_9 = arith.constant 1.250000e-01 : f32
    %9 = vector.broadcast %cst_9 : f32 to vector<1x256xf32>
    %10 = arith.mulf %8, %9 : vector<1x256xf32>
    %11 = vector.broadcast %10 : vector<1x256xf32> to vector<8x256xf32>
    %12 = arith.subf %6, %11 : vector<8x256xf32>
    %13 = arith.mulf %12, %12 : vector<8x256xf32>
    %cst_10 = arith.constant dense<0.000000e+00> : vector<256xf32>
    %14 = vector.multi_reduction <add>, %13, %cst_10 [0] : vector<8x256xf32> to vector<256xf32>
    %15 = vector.shape_cast %14 : vector<256xf32> to vector<1x256xf32>
    %cst_11 = arith.constant 1.250000e-01 : f32
    %16 = vector.broadcast %cst_11 : f32 to vector<1x256xf32>
    %17 = arith.mulf %15, %16 : vector<1x256xf32>
    %cst_12 = arith.constant 9.99999974E-6 : f32
    %18 = vector.broadcast %cst_12 : f32 to vector<1x256xf32>
    %19 = arith.addf %17, %18 : vector<1x256xf32>
    %20 = math.rsqrt %19 : vector<1x256xf32>
    %c0_13 = arith.constant 0 : index
    %c0_14 = arith.constant 0 : index
    %21 = vector.load %arg3[%c0_13, %c0_14] : memref<1x256xf32, #tpu.memory_space<vmem>>, vector<1x256xf32>
    %22 = arith.mulf %20, %21 : vector<1x256xf32>
    %23 = vector.broadcast %22 : vector<1x256xf32> to vector<8x256xf32>
    %24 = arith.mulf %12, %23 : vector<8x256xf32>
    %c0_15 = arith.constant 0 : index
    %c0_16 = arith.constant 0 : index
    %25 = vector.load %arg4[%c0_15, %c0_16] : memref<1x256xf32, #tpu.memory_space<vmem>>, vector<1x256xf32>
    %26 = vector.broadcast %25 : vector<1x256xf32> to vector<8x256xf32>
    %27 = arith.addf %24, %26 : vector<8x256xf32>
    %c0_17 = arith.constant 0 : index
    %c0_18 = arith.constant 0 : index
    %28 = vector.load %arg5[%c0_17, %c0_18] : memref<8x256xf32, #tpu.memory_space<vmem>>, vector<8x256xf32>
    tpu.vector_store %arg5[%c0_17, %c0_18], %27 {strides = array<i32>} : memref<8x256xf32, #tpu.memory_space<vmem>>, vector<8x256xf32>,
    return
  }
  func.func @transform_0(%arg0: i32) -> (i32, i32) {
    %c0_i32 = arith.constant 0 : i32
    %c0_i32_0 = arith.constant 0 : i32
    %c0_i32_1 = arith.constant 0 : i32
    return %c0_i32, %c0_i32_0 : i32, i32
  }
  func.func @transform_1(%arg0: i32) -> (i32, i32) {
    %c0_i32 = arith.constant 0 : i32
    %c0_i32_0 = arith.constant 0 : i32
    return %c0_i32, %arg0 : i32, i32
  }
  func.func @transform_2(%arg0: i32) -> (i32, i32) {
    %c0_i32 = arith.constant 0 : i32
    %c0_i32_0 = arith.constant 0 : i32
    return %c0_i32, %arg0 : i32, i32
  }
  func.func @transform_3(%arg0: i32) -> (i32, i32) {
    %c0_i32 = arith.constant 0 : i32
    %c0_i32_0 = arith.constant 0 : i32
    return %c0_i32, %arg0 : i32, i32
  }
  func.func @transform_4(%arg0: i32) -> (i32, i32) {
    %c0_i32 = arith.constant 0 : i32
    %c0_i32_0 = arith.constant 0 : i32
    return %c0_i32, %arg0 : i32, i32
  }
}

</mosaic_0001>

<bundles_post_ra>
// kernel: tpu_custom_call.1
= control target key start
LH: loop header
LB: loop body
LE: loop exit
PB: predicated region body
PF: predicated region fallthrough
CT: control target
= control target key end

     0   :  { %9 = vsyncpa [#allocation3], 0  ;;  %s1118_s0 = inlined_call_operand.hbm [shape: f32[8,128], index: 0, kind: input, shape index: {}]   ;;  %s1119_s1 = inlined_call_operand.hbm [shape: f32[128,512], index: 1, kind: input, shape index: {}]   ;;  %s1120_s2 = inlined_call_operand.hbm [shape: f32[1,512], index: 2, kind: input, shape index: {}]   ;;  %s1121_s3 = inlined_call_operand.vmem [shape: f32[1,512], index: 3, kind: input, shape index: {}]   ;;  %s1122_s4 = inlined_call_operand.hbm [shape: f32[8,512], index: 4, kind: output, shape index: {}]  }
   0x1   :  { %10 = vsyncpa [#allocation6], 0 }
   0x2   :  { %12 = vsyncpa [#allocation6 + $0x1], 0 }
   0x3   :  { %13 = vsyncpa [#allocation4], 0 }
   0x4   :  { %15 = vsyncpa [#allocation4 + $0x1], 0  ;;  %s877_s15 = smov 0   ;;  %s879_s16 = smov 0  }
   0x5   :  { %s881_s17 = smov 0   ;;  %s883_s18 = smov 0  }
   0x6 LB: > { %s898_s19 = sadd.s32 1, %s842_s18   ;;  %s49_s20 = sadd.s32 1, %s838_s17  ;;  %s842_s18 = sphi %s883_s18, %s1142_s18   ;;  %s838_s17 = sphi %s881_s17, %s1141_s17   ;;  %s834_s16 = sphi %s879_s16, %s1140_s16   ;;  %s830_s15 = sphi %s877_s15, %s1139_s15  }
   0x7   : > { %s46_s21 = ssub.s32 %s842_s18, %s898_s19  ;;  %p56_p0 = scmp.ne.s32.totalorder %s838_s17, %s834_s16 }
   0x8   : > { %p47_p1 = scmp.eq.s32.totalorder %s46_s21, 0  ;;  %p57_p2 = scmp.eq.s32.totalorder %s842_s18, 0 }
   0x9   : > { %p648_p4 = scmp.lt.s32.totalorder %s842_s18, 2  ;;  %s175_s23 = sand.u32 1, %s842_s18  }
   0xa   : > { %s909_s22 = scalar_select %p47_p1, %s838_s17, %s49_s20  }
   0xb   : > { %p58_p5 = por %p57_p2, %p56_p0  ;;  %s177_s24 = sand.u32 1, %s838_s17  }
   0xc   : > { %s602_s25 = sshll.u32 %s177_s24, 8  ;;  %s619_s26 = sshll.u32 %s842_s18, 8 }
   0xd   : > { %s922_s29 = scalar_lea.hbm %s1119_s1, %s619_s26  ;;  %s179_s30 = scalar_lea.vmem [#allocation5], %s602_s25 }
   0xe   : > { %s186_s5 = sshll.u32 %s179_s30, 4  ;;  %p924_p6 = pnand %p648_p4, %p58_p5  ;;  %s928_s5 = int_to_ptr.vmem [resolvable:$true] %s186_s5 }
   0xf   : > { %s930_s7 = scalar_lea.sflag [#allocation6], %s175_s23  ;;  %s692_s8 = scalar_lea.hbm %s922_s29, 4096 }
  0x10   : > { %p693_p7 = scmp.ne.s32.totalorder %s922_s29, %s692_s8  ;;  %p1123_p8 = pneg %p924_p6 }
  0x11   : > { %s697_s11 = scalar_lea.hbm %s1119_s1, 8192  ;;  %p698_p11 = scmp.lt.s32.totalorder %s922_s29, %s1119_s1 }
  0x12   : > { %p695_p9 = pnand %p1123_p8, %p693_p7  ;;  %p699_p12 = scmp.lt.s32.totalorder %s697_s11, %s692_s8 }
  0x14   : > { %p696_p10 = pneg %p695_p9  ;;  %p700_p13 = por %p699_p12, %p698_p11 }
  0x16   : > { %p701_p1 = pnand %p700_p13, %p696_p10 }
  0x18   : > { %704 = shalt.err (!%p701_p1)
}
  0x19   : > { %s705_s14 = scalar_lea.vmem %s928_s5, 4096  ;;  %s844_s20 = smov [#allocation5]  }
  0x1a   : > { %p706_p2 = scmp.ne.s32.totalorder %s928_s5, %s705_s14  ;;  %s710_s21 = sshll.u32 %s844_s20, 4  ;;  %s711_s21 = int_to_ptr.vmem [resolvable:$false] %s710_s21 }
  0x1b   : > { %s712_s23 = scalar_lea.vmem %s711_s21, 8192  ;;  %p713_p7 = scmp.lt.s32.totalorder %s928_s5, %s711_s21 }
  0x1c   : > { %p708_p4 = pnand %p706_p2, %p1123_p8  ;;  %p714_p9 = scmp.lt.s32.totalorder %s712_s23, %s705_s14 }
  0x1e   : > { %p709_p5 = pneg %p708_p4  ;;  %p715_p3 = por %p714_p9, %p713_p7 }
  0x20   : > { %p716_p11 = pnand %p715_p3, %p709_p5 }
  0x22   : > { %719 = shalt.err (!%p716_p11)
}
  0x23   : > { %s845_s25 = smov 512   ;;  %s846_s26 = smov 256  }
  0x24   : > { %s847_s27 = smov 16   ;;  %s958_s28 = sadd.s32 4294967295, %s842_s18  }
  0x25   : > { %639 = dma.hbm_to_vmem [thread:$0]  (!%p924_p6), %s922_s29, 4096, %s928_s5, %s930_s7, %s845_s25, %s846_s26, %s847_s27  }
  0x26   : > { %s598_s30 = sadd.s32 4294967294, %s842_s18   ;;  %p62_p3 = scmp.ne.s32.totalorder %s834_s16, %s830_s15 }
  0x27   : > { %p1125_p10 = scmp.eq.s32.totalorder %s958_s28, 0  ;;  %p138_p12 = scmp.eq.s32.totalorder %s958_s28, 1 }
  0x28   : > { %p144_p13 = scmp.eq.s32.totalorder %s598_s30, 1  ;;  %p599_p1 = scmp.ge.s32.totalorder %s842_s18, 1 }
  0x29   : > { %p968_p2 = por %p1125_p10, %p62_p3  ;;  %p975_p4 = por %p138_p12, %p56_p0 }
  0x2a   : > { %p979_p5 = por %p144_p13, %p62_p3  ;;  %p151_p7 = scmp.lt.s32.totalorder %s842_s18, 3 }
  0x2b   : > { %s1128_s8 = scalar_select %p968_p2, 1, 0 }
  0x2c   : > { %s1129_s29 = scalar_select %p975_p4, 1, 0 }
  0x2d   : > { %s1130_s5 = scalar_select %p979_p5, 1, 0 }
  0x2e   : > { %p984_p9 = pnand %p599_p1, %p151_p7  ;;  %s848_s10 = smov [#allocation2]  }
  0x2f   : > { %s164_s11 = sshll.u32 %s848_s10, 4  ;;  %s605_s12 = sshll.u32 %s177_s24, 1  ;;  %s165_s11 = int_to_ptr.vmem [resolvable:$true] %s164_s11 }
  0x30   : > { %p632_p11 = pneg %p984_p9  ;;  %s620_s13 = sshll.u32 %s842_s18, 5 }
  0x31   : > { %s200_s14 = scalar_lea.vmem [#allocation7], %s605_s12  ;;  %s998_s25 = scalar_lea.hbm %s1120_s2, %s620_s13 }
  0x32   : > { %s208_s20 = sshll.u32 %s200_s14, 4  ;;  %p633_p0 = pnand %p632_p11, %p1125_p10  ;;  %s1000_s20 = int_to_ptr.vmem [resolvable:$true] %s208_s20 }
  0x33   : > { %s731_s26 = scalar_lea.vmem %s165_s11, 128  ;;  %p739_p7 = scmp.lt.s32.totalorder %s165_s11, %s165_s11 }
  0x34   : > { %p722_p3 = pneg %p633_p0  ;;  %p732_p12 = scmp.ne.s32.totalorder %s165_s11, %s731_s26 }
  0x35   : > { %p740_p8 = scmp.lt.s32.totalorder %s731_s26, %s731_s26 }
  0x36   : > { %p734_p13 = pnand %p732_p12, %p722_p3 }
  0x37   : > { %p741_p5 = por %p740_p8, %p739_p7 }
  0x38   : > { %p735_p1 = pneg %p734_p13 }
  0x3a   : > { %p742_p4 = pnand %p741_p5, %p735_p1 }
  0x3c   : > { %745 = shalt.err (!%p742_p4)
}
  0x3d   : > { %635 = dma.hbm_to_vmem [thread:$0]  (!%p633_p0), %s1118_s0, 128, %s165_s11, [#allocation3]  }
  0x3e   : > { %s746_s30 = scalar_lea.hbm %s998_s25, 32  ;;  %p1132_p10 = pneg %p924_p6 }
  0x3f   : > { %p747_p11 = scmp.ne.s32.totalorder %s998_s25, %s746_s30  ;;  %s751_s13 = scalar_lea.hbm %s1120_s2, 64 }
  0x40   : > { %p752_p8 = scmp.lt.s32.totalorder %s998_s25, %s1120_s2  ;;  %p753_p4 = scmp.lt.s32.totalorder %s751_s13, %s746_s30 }
  0x41   : > { %p749_p2 = pnand %p747_p11, %p1132_p10 }
  0x42   : > { %p754_p5 = por %p753_p4, %p752_p8 }
  0x43   : > { %p750_p3 = pneg %p749_p2 }
  0x45   : > { %p755_p12 = pnand %p754_p5, %p750_p3 }
  0x47   : > { %758 = shalt.err (!%p755_p12)
}
  0x48   : > { %s759_s11 = scalar_lea.vmem %s1000_s20, 32  ;;  %s849_s23 = smov [#allocation7]  }
  0x49   : > { %p760_p0 = scmp.ne.s32.totalorder %s1000_s20, %s759_s11  ;;  %s764_s26 = sshll.u32 %s849_s23, 4  ;;  %s765_s26 = int_to_ptr.vmem [resolvable:$false] %s764_s26 }
  0x4a   : > { %s766_s24 = scalar_lea.vmem %s765_s26, 64  ;;  %p767_p1 = scmp.lt.s32.totalorder %s1000_s20, %s765_s26 }
  0x4b   : > { %p762_p2 = pnand %p760_p0, %p1132_p10  ;;  %p768_p7 = scmp.lt.s32.totalorder %s766_s24, %s759_s11 }
  0x4d   : > { %p763_p13 = pneg %p762_p2  ;;  %p769_p11 = por %p768_p7, %p767_p1 }
  0x4f   : > { %p770_p8 = pnand %p769_p11, %p763_p13 }
  0x51   : > { %773 = shalt.err (!%p770_p8)
}
  0x52   : > { %642 = dma.hbm_to_vmem [thread:$0]  (!%p924_p6), %s998_s25, 32, %s1000_s20, %s930_s7  }
  0x53   : > { %225 = sbr.rel (%p984_p9) target bundleno = 393 (0x189), region = 36  ;;  %p1133_p3 = scmp.eq.s32.totalorder (!%p984_p9), %s958_s28, 0 }
  0x58   : > { %817 = dma.done.wait (%p1133_p3), [#allocation3], 128   ;;  %p1134_p4 = pmov %p1133_p3 }
  0x59   : > { %s231_s27 = sand.u32 1, %s958_s28   ;;  %s1036_s30 = sand.u32 1, %s834_s16  }
  0x5a   : > { %819 = vsyncadd (%p1134_p4), [#allocation3], 4294967168  ;;  %s610_s6 = sshll.u32 %s1036_s30, 8  ;;  %s232_s10 = scalar_lea.sflag [#allocation6], %s231_s27 }
  0x5b   : > { %s1039_s12 = scalar_lea.vmem [#allocation5], %s610_s6  ;;  %p1135_p6 = scmp.ne.s32.totalorder %s1128_s8, 0 }
  0x5d   : > { %821 = dma.done.wait (%p1135_p6), %s232_s10, 4128  }
  0x5e   : > { %823 = vsyncadd (%p1135_p6), %s232_s10, 4294963168  ;;  %v850_v0 = vmov 0.0   ;;  %v318_v1 = vld [vmem:[%s1039_s12 + $0xf8] sm:$0xff]  ;;  %v317_v2 = vld [vmem:[%s1039_s12 + $0xf0] sm:$0xff]  ;;  %s613_s7 = sshll.u32 %s958_s28, 1  ;;  %s611_s8 = sshll.u32 %s1036_s30, 1 }
  0x5f   : > { %383 = vmatprep.mubr.f32.mxu0 %v850_v0  ;;  %v316_v3 = vld [vmem:[%s1039_s12 + $0xe8] sm:$0xff]  ;;  %319 = vmatprep.subr.mxu0 %v318_v1  ;;  %v315_v4 = vld [vmem:[%s1039_s12 + $0xe0] sm:$0xff]  ;;  %v314_v5 = vld [vmem:[%s1039_s12 + $0xd8] sm:$0xff]  ;;  %p281_p9 = scmp.lt.s32.totalorder %s613_s7, 3  ;;  %s244_s9 = scalar_lea.vmem [#allocation7], %s611_s8 }
  0x60   : > { %320 = vmatpush1.msra.mxu0 %v317_v2  ;;  %v313_v6 = vld [vmem:[%s1039_s12 + $0xd0] sm:$0xff]  ;;  %v312_v7 = vld [vmem:[%s1039_s12 + $0xc8] sm:$0xff]  ;;  %v311_v8 = vld [vmem:[%s1039_s12 + $0xc0] sm:$0xff]  ;;  %s612_s14 = sshll.u32 %s1036_s30, 4  ;;  %s621_s21 = sshll.u32 %s958_s28, 8 }
  0x61   : > { %321 = vmatprep.subr.mxu0 %v316_v3  ;;  %v310_v9 = vld [vmem:[%s1039_s12 + $0xb8] sm:$0xff]  ;;  %v309_v10 = vld [vmem:[%s1039_s12 + $0xb0] sm:$0xff]  ;;  %v308_v11 = vld [vmem:[%s1039_s12 + $0xa8] sm:$0xff]  ;;  %s1144_s7 = smov (!%p281_p9, %s613_s7), 3  ;;  %s277_s11 = scalar_lea.vmem [#allocation8], %s612_s14 }
  0x62   : > { %322 = vmatpush1.msra.mxu0 %v315_v4  ;;  %v307_v12 = vld [vmem:[%s1039_s12 + $0xa0] sm:$0xff]  ;;  %v306_v13 = vld [vmem:[%s1039_s12 + $0x98] sm:$0xff]  ;;  %v305_v14 = vld [vmem:[%s1039_s12 + $0x90] sm:$0xff]  ;;  %s283_s13 = scalar_lea.vmem %s1121_s3, %s1144_s7  ;;  %s487_s23 = sshll.u32 %s277_s11, 4  ;;  %s488_s23 = int_to_ptr.vmem [resolvable:$true] %s487_s23 }
  0x63   : > { %323 = vmatprep.subr.mxu0 %v314_v5  ;;  %v304_v15 = vld [vmem:[%s1039_s12 + $0x88] sm:$0xff]  ;;  %v303_v16 = vld [vmem:[%s1039_s12 + $0x80] sm:$0xff]  ;;  %v302_v17 = vld [vmem:[%s1039_s12 + $0x78] sm:$0xff]  ;;  %s485_s27 = scalar_lea.hbm %s1122_s4, %s621_s21  ;;  %s473_s6 = scalar_lea.sflag [#allocation4], %s1036_s30 }
  0x64   : > { %324 = vmatpush1.msra.mxu0 %v313_v6  ;;  %v301_v18 = vld [vmem:[%s1039_s12 + $0x70] sm:$0xff]  ;;  %v300_v19 = vld [vmem:[%s1039_s12 + $0x68] sm:$0xff]  ;;  %v299_v20 = vld [vmem:[%s1039_s12 + $0x60] sm:$0xff]  ;;  %s774_s10 = scalar_lea.vmem %s488_s23, 256  ;;  %p1136_p12 = scmp.ne.s32.totalorder %s1129_s29, 0 }
  0x65   : > { %325 = vmatprep.subr.mxu0 %v312_v7  ;;  %v298_v21 = vld [vmem:[%s1039_s12 + $0x58] sm:$0xff]  ;;  %v297_v22 = vld [vmem:[%s1039_s12 + $0x50] sm:$0xff]  ;;  %v296_v23 = vld [vmem:[%s1039_s12 + $0x48] sm:$0xff]  ;;  %v434_v7 = vlaneseq  ;;  %p775_p5 = scmp.ne.s32.totalorder %s488_s23, %s774_s10 }
  0x66   : > { %326 = vmatpush1.msra.mxu0 %v311_v8  ;;  %v295_v24 = vld [vmem:[%s1039_s12 + $0x40] sm:$0xff]  ;;  %v294_v25 = vld [vmem:[%s1039_s12 + $0x38] sm:$0xff]  ;;  %v293_v26 = vld [vmem:[%s1039_s12 + $0x30] sm:$0xff] }
  0x67   : > { %327 = vmatprep.subr.mxu0 %v310_v9  ;;  %v292_v27 = vld [vmem:[%s1039_s12 + $0x28] sm:$0xff]  ;;  %v291_v28 = vld [vmem:[%s1039_s12 + $0x20] sm:$0xff]  ;;  %v290_v29 = vld [vmem:[%s1039_s12 + $0x18] sm:$0xff]  ;;  %v435_v9 = vshrl.u32 %v434_v7, 7  ;;  %p776_p0 = pnand %p775_p5, %p1136_p12 }
  0x68   : > { %328 = vmatpush1.msra.mxu0 %v309_v10  ;;  %v289_v30 = vld [vmem:[%s1039_s12 + $0x10] sm:$0xff]  ;;  %v288_v31 = vld [vmem:[%s1039_s12 + $0x8] sm:$0xff]  ;;  %v287_v32 = vld [vmem:[%s1039_s12] sm:$0xff]  ;;  %s851_s12 = smov [#allocation8]  }
  0x69   : > { %329 = vmatprep.subr.mxu0 %v308_v11  ;;  %v286_v33 = vld [vmem:[#allocation2] sm:$0xff]  ;;  %v436_v10 = vsub.s32 0, %v435_v9  ;;  %v432_v11 = vld [vmem:[%s244_s9] sm:$0x3]  ;;  %p777_p10 = pneg %p776_p0  ;;  %s778_s28 = sshll.u32 %s851_s12, 4  ;;  %s779_s28 = int_to_ptr.vmem [resolvable:$false] %s778_s28 }
  0x6a   : > { %330 = vmatpush1.msra.mxu0 %v307_v12  ;;  %v440_v12 = vsub.s32 1, %v435_v9  ;;  %s780_s7 = scalar_lea.vmem %s779_s28, 512  ;;  %p781_p2 = scmp.lt.s32.totalorder %s488_s23, %s779_s28 }
  0x6b   : > { %331 = vmatprep.subr.mxu0 %v306_v13  ;;  %v437_v13 = vrot.slane %v432_v11, %v436_v10  ;;  %p782_p13 = scmp.lt.s32.totalorder %s780_s7, %s774_s10 }
  0x6c   : > { %332 = vmatpush1.msra.mxu0 %v305_v14  ;;  %v441_v14 = vrot.slane %v432_v11, %v440_v12 }
  0x6d   : > { %333 = vmatprep.subr.mxu0 %v304_v15  ;;  %p783_p1 = por %p782_p13, %p781_p2 }
  0x6e   : > { %334 = vmatpush1.msra.mxu0 %v303_v16  ;;  %v456_v16 = vld [vmem:[%s283_s13] sm:$0x3] }
  0x6f   : > { %335 = vmatprep.subr.mxu0 %v302_v17  ;;  %p784_p7 = pnand %p783_p1, %p777_p10 }
  0x70   : > { %336 = vmatpush1.msra.mxu0 %v301_v18 }
  0x71   : > { %337 = vmatprep.subr.mxu0 %v300_v19 }
  0x72   : > { %338 = vmatpush1.msra.mxu0 %v299_v20 }
  0x73   : > { %339 = vmatprep.subr.mxu0 %v298_v21  ;;  %v461_v21 = vrot.slane %v456_v16, %v436_v10 }
  0x74   : > { %340 = vmatpush1.msra.mxu0 %v297_v22 }
  0x75   : > { %341 = vmatprep.subr.mxu0 %v296_v23 }
  0x76   : > { %342 = vmatpush1.msra.mxu0 %v295_v24  ;;  %v465_v24 = vrot.slane %v456_v16, %v440_v12 }
  0x77   : > { %343 = vmatprep.subr.mxu0 %v294_v25 }
  0x78   : > { %344 = vmatpush1.msra.mxu0 %v293_v26 }
  0x79   : > { %345 = vmatprep.subr.mxu0 %v292_v27 }
  0x7a   : > { %346 = vmatpush1.msra.mxu0 %v291_v28 }
  0x7b   : > { %347 = vmatprep.subr.mxu0 %v290_v29 }
  0x7c   : > { %348 = vmatpush1.msra.mxu0 %v289_v30 }
  0x7d   : > { %349 = vmatprep.subr.mxu0 %v288_v31 }
  0x7e   : > { %350 = vmatpush1.msra.mxu0 %v287_v32 }
  0x7f   : > { %384 = vmatmul.mubr.f32.vlgmr.msra.gmra.mxu0 %v286_v33 }
 0x13f   : > { %v385_v34 = vpop.f32.mrf.mxu0 }
 0x140   : > { %v390_v35 = vmax.f32 %v385_v34, 0.0 }
 0x141   : > { %v387_v36 = vpop.f32.mrf.mxu0 }
 0x142   : > { %v391_v37 = vmax.f32 %v387_v36, 0.0  ;;  %v396_v38 = vrot.slane %v390_v35, 4 }
 0x144   : > { %v397_v39 = vadd.f32 %v396_v38, %v390_v35  ;;  %v402_v40 = vrot.slane %v391_v37, 4 }
 0x146   : > { %v398_v41 = vrot.slane %v397_v39, 2  ;;  %v403_v42 = vadd.f32 %v402_v40, %v391_v37 }
 0x148   : > { %v399_v43 = vadd.f32 %v398_v41, %v397_v39  ;;  %v404_v44 = vrot.slane %v403_v42, 2 }
 0x14a   : > { %v400_v45 = vrot.slane %v399_v43, 1  ;;  %v405_v46 = vadd.f32 %v404_v44, %v403_v42 }
 0x14c   : > { %v401_v47 = vadd.f32 %v400_v45, %v399_v43  ;;  %v406_v48 = vrot.slane %v405_v46, 1 }
 0x14e   : > { %v407_v49 = vadd.f32 %v406_v48, %v405_v46  ;;  %v408_v50 = vmul.f32 0.125, %v401_v47 }
 0x150   : > { %v409_v51 = vmul.f32 0.125, %v407_v49  ;;  %v410_v52 = vsub.f32 %v390_v35, %v408_v50 }
 0x152   : > { %v411_v53 = vsub.f32 %v391_v37, %v409_v51  ;;  %v412_v54 = vmul.f32 %v410_v52, %v410_v52 }
 0x154   : > { %v413_v55 = vmul.f32 %v411_v53, %v411_v53  ;;  %v414_v56 = vrot.slane %v412_v54, 4 }
 0x156   : > { %v415_v57 = vadd.f32 %v414_v56, %v412_v54  ;;  %v420_v58 = vrot.slane %v413_v55, 4 }
 0x158   : > { %v416_v59 = vrot.slane %v415_v57, 2  ;;  %v421_v60 = vadd.f32 %v420_v58, %v413_v55 }
 0x15a   : > { %v417_v61 = vadd.f32 %v416_v59, %v415_v57  ;;  %v422_v62 = vrot.slane %v421_v60, 2 }
 0x15c   : > { %v418_v63 = vrot.slane %v417_v61, 1  ;;  %v423_v0 = vadd.f32 %v422_v62, %v421_v60 }
 0x15e   : > { %v419_v1 = vadd.f32 %v418_v63, %v417_v61  ;;  %v424_v2 = vrot.slane %v423_v0, 1 }
 0x160   : > { %v425_v3 = vadd.f32 %v424_v2, %v423_v0  ;;  %v426_v4 = vmul.f32 0.125, %v419_v1 }
 0x162   : > { %v427_v5 = vmul.f32 0.125, %v425_v3  ;;  %v428_v6 = vadd.f32 1e-05, %v426_v4 }
 0x164   : > { %v429_v8 = vadd.f32 1e-05, %v427_v5  ;;  %688 = vrsqrt.f32 %v428_v6 }
 0x166   : > { %690 = vrsqrt.f32 %v429_v8 }
 0x171   : > { %v689_v15 = vpop.eup %688 }
 0x172   : > { %v444_v17 = vmul.f32 %v689_v15, %v437_v13 }
 0x173   : > { %v691_v18 = vpop.eup %690 }
 0x174   : > { %v445_v19 = vmul.f32 %v691_v18, %v441_v14  ;;  %v449_v20 = vrot.slane %v444_v17, %v436_v10 }
 0x176   : > { %v453_v22 = vrot.slane %v445_v19, %v436_v10  ;;  %v454_v23 = vmul.f32 %v449_v20, %v410_v52 }
 0x178   : > { %v455_v25 = vmul.f32 %v453_v22, %v411_v53  ;;  %v468_v26 = vadd.f32 %v461_v21, %v454_v23 }
 0x17a   : > { %v469_v27 = vadd.f32 %v465_v24, %v455_v25  ;;  %470 = vst [vmem:[%s277_s11] sm:$0xff] %v468_v26 }
 0x17c   : > { %471 = vst [vmem:[%s277_s11 + $0x8] sm:$0xff] %v469_v27 }
 0x17d   : > { %787 = shalt.err (!%p784_p7)
}
 0x17e   : > { %s788_s8 = scalar_lea.hbm %s485_s27, 256  ;;  %s792_s20 = scalar_lea.hbm %s1122_s4, 512 }
 0x17f   : > { %p789_p11 = scmp.ne.s32.totalorder %s485_s27, %s788_s8  ;;  %p793_p4 = scmp.lt.s32.totalorder %s485_s27, %s1122_s4 }
 0x180   : > { %p794_p6 = scmp.lt.s32.totalorder %s792_s20, %s788_s8 }
 0x181   : > { %p790_p8 = pnand %p789_p11, %p1136_p12 }
 0x182   : > { %p795_p9 = por %p794_p6, %p793_p4 }
 0x183   : > { %p791_p3 = pneg %p790_p8 }
 0x185   : > { %p796_p5 = pnand %p795_p9, %p791_p3 }
 0x187   : > { %799 = shalt.err (!%p796_p5)
}
 0x188   : > { %630 = dma.vmem_to_hbm [thread:$0]  (%p1136_p12), %s488_s23, 256, %s485_s27, %s473_s6  }
 0x189 PF: > { %s499_s14 = sand.u32 1, %s830_s15   ;;  %p1137_p0 = scmp.ne.s32.totalorder %s1130_s5, 0 }
 0x18a   : > { %p1138_p10 = scmp.ge.s32.totalorder %s842_s18, 2  ;;  %s500_s21 = scalar_lea.sflag [#allocation4], %s499_s14 }
 0x18c   : > { %p644_p2 = pnand %p1138_p10, %p1137_p0 }
 0x18e   : > { %p645_p13 = pneg %p644_p2 }
 0x190   : > { %825 = dma.done.wait (%p645_p13), %s500_s21, 256  }
 0x191   : > { %827 = vsyncadd (%p645_p13), %s500_s21, 4294967040  ;;  %p18_p1 = scmp.ge.s32.totalorder %s898_s19, 4   ;;  %s1139_s15 = smov %s834_s16 }
 0x192   : > { %s1140_s16 = smov %s838_s17  ;;  %s1141_s17 = smov %s909_s22 }
 0x193   : > { %s1142_s18 = smov %s898_s19  ;;  %20 = sbr.rel (!%p18_p1) target bundleno = 6 (0x6), region = 100 }
 0x198   :  { %505 = vsyncpa [#allocation3], 1 }
 0x199   :  { %507 = vsyncpa [#allocation3 + $0x1], 1 }
 0x19a   :  { %508 = vsyncpa [#allocation6], 1 }
 0x19b   :  { %510 = vsyncpa [#allocation6 + $0x1], 1 }
 0x19c   :  { %511 = vsyncpa [#allocation4], 1 }
 0x19d   :  { %513 = vsyncpa [#allocation4 + $0x1], 1 }

</bundles_post_ra>
